<compile_context>
chip_gen: v5e
topology: v5e:2x2
jax: 0.10.0
libtpu: 0.0.40
codegen_flags: <defaults>
</compile_context>

<pallas_src>
import jax
import jax.numpy as jnp
from jax import lax
from jax.experimental import pallas as pl
from jax.experimental.pallas import tpu as pltpu


def _round_up(x, m):
    return ((x + m - 1) // m) * m


def _choose_tile(B, block_b):
    """Pick (TB, B_pad): TB is a multiple of 128 and <= block_b, B_pad is a
    multiple of TB with minimal padding waste, preferring >=2 grid steps so the
    batch axis can be sharded across v7x's two TensorCores."""
    block_b = max(128, (block_b // 128) * 128)
    B128 = _round_up(max(B, 1), 128)
    n = B128 // 128                              # batch size in 128-lane blocks
    d_cap = max(1, min(block_b // 128, n))
    if n >= 2:                                   # leave at least 2 grid steps
        d_cap = max(1, min(d_cap, n // 2))
    d = max(x for x in range(1, d_cap + 1) if n % x == 0)
    if 2 * d <= d_cap:
        # n has no decent divisor (e.g. prime): trade a little padding for a
        # full-size tile instead of many tiny grid steps.
        d = d_cap
        b_pad = _round_up(B128, d * 128)
    else:
        b_pad = B128
    return d * 128, b_pad


def _twinq_kernel(sa_ref, w1_ref, w2q1_ref, w2q2_ref, vec_ref, b3_ref, out_ref):
    """One batch tile of TB rows. Intermediates are (features, TB) feature-major
    so the final q row is a lane-dense (1, TB) unmasked store."""
    H = w2q1_ref.shape[0]

    # ---- Layer 1, both heads fused: contract the feature axis of the
    # batch-major sa tile -> (2H, TB), f32 accumulation on the MXU. -------------
    pre = lax.dot_general(
        w1_ref[...], sa_ref[...],
        dimension_numbers=(((1,), (1,)), ((), ())),
        preferred_element_type=jnp.float32)
    h_cat = jnp.maximum(pre + vec_ref[:, 0:1], 0.0)            # (2H, TB)

    h1 = h_cat[:H, :]                                          # (H, TB)
    h2 = h_cat[H:, :]

    # ---- Layer 2: one MXU matmul per head. ------------------------------------
    z1 = jnp.dot(w2q1_ref[...], h1, preferred_element_type=jnp.float32)
    z1 = jnp.maximum(z1 + vec_ref[:H, 1:2], 0.0)               # (H, TB)
    z2 = jnp.dot(w2q2_ref[...], h2, preferred_element_type=jnp.float32)
    z2 = jnp.maximum(z2 + vec_ref[H:, 1:2], 0.0)

    # ---- Layer 3, Linear(H, 1), on the VPU/XLU (mul + sublane reduce):
    # avoids an N=1 MXU pass and keeps the output lane-dense. -------------------
    q1 = jnp.sum(z1 * vec_ref[:H, 2:3], axis=0, keepdims=True) + b3_ref[:, 0:1]
    q2 = jnp.sum(z2 * vec_ref[H:, 2:3], axis=0, keepdims=True) + b3_ref[:, 1:2]
    out_ref[...] = jnp.minimum(q1, q2)                         # (1, TB)


def twinq_forward(state, action, params, *, block_b=2048):
    """Pallas TwinQ forward. Returns shape (B,) like the squeezed torch output."""
    B, S = state.shape
    A = action.shape[1]
    SA = S + A
    p1, p2 = params["q1"], params["q2"]
    H = p1["w2"].shape[0]

    TB, B_pad = _choose_tile(B, block_b)
    grid = (B_pad // TB,)

    # Single sa = [state, action] concat (+ minimal row padding), batch-major f32.
    sa = jnp.concatenate([state, action], axis=1).astype(jnp.float32)
    if B_pad != B:
        sa = jnp.pad(sa, ((0, B_pad - B), (0, 0)))

    # Fused layer-1 weight: both heads stacked along the output (row) axis.
    w1 = jnp.concatenate([p1["w1"].T, p2["w1"].T], axis=0).astype(jnp.float32)  # (2H, SA)
    w2q1 = p1["w2"].T.astype(jnp.float32)                                       # (H, H)
    w2q2 = p2["w2"].T.astype(jnp.float32)                                       # (H, H)

    # Pack all small per-head column vectors into one (2H, 3) array:
    #   col 0 = layer-1 bias (both heads), col 1 = layer-2 bias, col 2 = w3.
    vec = jnp.stack(
        [jnp.concatenate([p1["b1"][0], p2["b1"][0]]),
         jnp.concatenate([p1["b2"][0], p2["b2"][0]]),
         jnp.concatenate([p1["w3"][:, 0], p2["w3"][:, 0]])],
        axis=1).astype(jnp.float32)                                             # (2H, 3)
    b3 = jnp.concatenate([p1["b3"], p2["b3"]], axis=1).astype(jnp.float32)      # (1, 2)

    def full_spec(x):
        return pl.BlockSpec(x.shape, lambda i: (0, 0))        # VMEM-resident consts

    in_specs = [
        pl.BlockSpec((TB, SA), lambda i: (i, 0)),             # sa tile, batch-major
        full_spec(w1), full_spec(w2q1), full_spec(w2q2),
        full_spec(vec), full_spec(b3),
    ]

    flops = 2 * B_pad * (2 * H * SA + 2 * H * H + 2 * H)
    bytes_accessed = 4 * (B_pad * SA + B_pad
                          + w1.size + w2q1.size + w2q2.size + vec.size + b3.size)

    out = pl.pallas_call(
        _twinq_kernel,
        out_shape=jax.ShapeDtypeStruct((1, B_pad), jnp.float32),
        grid=grid,
        in_specs=in_specs,
        out_specs=pl.BlockSpec((1, TB), lambda i: (0, i)),
        compiler_params=pltpu.CompilerParams(
            dimension_semantics=("parallel",),
            vmem_limit_bytes=48 * 1024 * 1024),
        cost_estimate=pl.CostEstimate(
            flops=flops, transcendentals=0, bytes_accessed=bytes_accessed),
    )(sa, w1, w2q1, w2q2, vec, b3)

    return out[0, :B]                                         # squeeze_output=True


def init_twinq_params(state_dim, action_dim, hidden_dim=256, n_hidden=2, seed=0):
    """Deterministic synthetic init; mirrors mlp(dims, squeeze_output=True).

    Weights stored as (in_features, out_features); biases as (1, out_features),
    so y = x @ W + b (equivalent to torch's x @ W.T + b with W_torch = W.T)."""
    assert n_hidden == 2, "kernel is specialized to the default n_hidden=2"
    in_dim = state_dim + action_dim
    key = jax.random.PRNGKey(seed)
    keys = jax.random.split(key, 12)

    def linear(kw, kb, fan_in, fan_out):
        bound = 1.0 / jnp.sqrt(jnp.float32(fan_in))
        w = jax.random.uniform(kw, (fan_in, fan_out), jnp.float32, -bound, bound)
        b = jax.random.uniform(kb, (1, fan_out), jnp.float32, -bound, bound)
        return w, b

    def head(ks):
        w1, b1 = linear(ks[0], ks[1], in_dim, hidden_dim)
        w2, b2 = linear(ks[2], ks[3], hidden_dim, hidden_dim)
        w3, b3 = linear(ks[4], ks[5], hidden_dim, 1)
        return {"w1": w1, "b1": b1, "w2": w2, "b2": b2, "w3": w3, "b3": b3}

    return {"q1": head(keys[:6]), "q2": head(keys[6:])}


def _reference(state, action, params):
    """Pure-JAX f32 reference of the torch forward."""
    sa = jnp.concatenate([state, action], axis=1)

    def mlp(p):
        h = jnp.maximum(sa @ p["w1"] + p["b1"], 0.0)
        h = jnp.maximum(h @ p["w2"] + p["b2"], 0.0)
        return (h @ p["w3"] + p["b3"])[:, 0]

    return jnp.minimum(mlp(params["q1"]), mlp(params["q2"]))


if __name__ == "__main__":
    B, STATE_DIM, ACTION_DIM, HIDDEN = 8, 16, 8, 32

    key = jax.random.PRNGKey(0)
    ks, ka = jax.random.split(key)
    state = jax.random.normal(ks, (B, STATE_DIM), jnp.float32)
    action = jax.random.normal(ka, (B, ACTION_DIM), jnp.float32)

    params = init_twinq_params(STATE_DIM, ACTION_DIM, hidden_dim=HIDDEN, n_hidden=2)

    fwd = jax.jit(twinq_forward)
    out = jax.block_until_ready(fwd(state, action, params))

    ref = _reference(state, action, params)
    assert out.shape == (B,)
    # f32 end-to-end now, so only accumulation-order differences remain.
    assert jnp.allclose(out, ref, atol=1e-4, rtol=1e-4), (out, ref)

    print("KERNEL_OK")
</pallas_src>

<mosaic_0001>
module attributes {stable_mosaic.version = 11 : i64} {
  func.func @_twinq_kernel(%arg0: i32, %arg1: memref<128x24xf32, #tpu.memory_space<vmem>>, %arg2: memref<64x24xf32, #tpu.memory_space<vmem>>, %arg3: memref<32x32xf32, #tpu.memory_space<vmem>>, %arg4: memref<32x32xf32, #tpu.memory_space<vmem>>, %arg5: memref<64x3xf32, #tpu.memory_space<vmem>>, %arg6: memref<1x2xf32, #tpu.memory_space<vmem>>, %arg7: memref<1x128xf32, #tpu.memory_space<vmem>>) attributes {dimension_semantics = [#tpu.dimension_semantics<parallel>], iteration_bounds = array<i64: 1>, scalar_prefetch = 0 : i64, scratch_operands = 0 : i64, tpu.core_type = #tpu.core_type<tc>, window_params = [{transform_indices = @transform_0, window_bounds = array<i64: 128, 24>}, {pipeline_mode = #tpu.pipeline_mode<synchronous>, transform_indices = @transform_1, window_bounds = array<i64: 64, 24>}, {pipeline_mode = #tpu.pipeline_mode<synchronous>, transform_indices = @transform_2, window_bounds = array<i64: 32, 32>}, {pipeline_mode = #tpu.pipeline_mode<synchronous>, transform_indices = @transform_3, window_bounds = array<i64: 32, 32>}, {pipeline_mode = #tpu.pipeline_mode<synchronous>, transform_indices = @transform_4, window_bounds = array<i64: 64, 3>}, {pipeline_mode = #tpu.pipeline_mode<synchronous>, transform_indices = @transform_5, window_bounds = array<i64: 1, 2>}, {transform_indices = @transform_6, window_bounds = array<i64: 1, 128>}]} {
    %c0 = arith.constant 0 : index
    %c0_0 = arith.constant 0 : index
    %0 = vector.load %arg2[%c0, %c0_0] : memref<64x24xf32, #tpu.memory_space<vmem>>, vector<64x24xf32>
    %c0_1 = arith.constant 0 : index
    %c0_2 = arith.constant 0 : index
    %1 = vector.load %arg1[%c0_1, %c0_2] : memref<128x24xf32, #tpu.memory_space<vmem>>, vector<128x24xf32>
    %cst = arith.constant dense<0.000000e+00> : vector<64x128xf32>
    %2 = tpu.matmul %0, %1, %cst {dimension_numbers = #tpu.dot_dimension_numbers<[1], [1], [0], [0], [0, 0, 1, 0], [], []>} : vector<64x24xf32>, vector<128x24xf32>, vector<64x128xf32> -> vector<64x128xf32>
    %c0_3 = arith.constant 0 : index
    %c0_4 = arith.constant 0 : index
    %3 = vector.load %arg5[%c0_3, %c0_4] : memref<64x3xf32, #tpu.memory_space<vmem>>, vector<64x1xf32>
    %4 = vector.broadcast %3 : vector<64x1xf32> to vector<64x128xf32>
    %5 = arith.addf %2, %4 : vector<64x128xf32>
    %cst_5 = arith.constant 0.000000e+00 : f32
    %6 = vector.broadcast %cst_5 : f32 to vector<64x128xf32>
    %7 = arith.maximumf %5, %6 : vector<64x128xf32>
    %8 = vector.extract_strided_slice %7 {offsets = [0, 0], sizes = [32, 128], strides = [1, 1]} : vector<64x128xf32> to vector<32x128xf32>
    %9 = vector.extract_strided_slice %7 {offsets = [32, 0], sizes = [32, 128], strides = [1, 1]} : vector<64x128xf32> to vector<32x128xf32>
    %c0_6 = arith.constant 0 : index
    %c0_7 = arith.constant 0 : index
    %10 = vector.load %arg3[%c0_6, %c0_7] : memref<32x32xf32, #tpu.memory_space<vmem>>, vector<32x32xf32>
    %cst_8 = arith.constant dense<0.000000e+00> : vector<32x128xf32>
    %11 = tpu.matmul %10, %8, %cst_8 {dimension_numbers = #tpu.dot_dimension_numbers<[1], [0], [0], [1], [0, 0, 1, 1], [], []>} : vector<32x32xf32>, vector<32x128xf32>, vector<32x128xf32> -> vector<32x128xf32>
    %c0_9 = arith.constant 0 : index
    %c1 = arith.constant 1 : index
    %12 = vector.load %arg5[%c0_9, %c1] : memref<64x3xf32, #tpu.memory_space<vmem>>, vector<32x1xf32>
    %13 = vector.broadcast %12 : vector<32x1xf32> to vector<32x128xf32>
    %14 = arith.addf %11, %13 : vector<32x128xf32>
    %cst_10 = arith.constant 0.000000e+00 : f32
    %15 = vector.broadcast %cst_10 : f32 to vector<32x128xf32>
    %16 = arith.maximumf %14, %15 : vector<32x128xf32>
    %c0_11 = arith.constant 0 : index
    %c0_12 = arith.constant 0 : index
    %17 = vector.load %arg4[%c0_11, %c0_12] : memref<32x32xf32, #tpu.memory_space<vmem>>, vector<32x32xf32>
    %cst_13 = arith.constant dense<0.000000e+00> : vector<32x128xf32>
    %18 = tpu.matmul %17, %9, %cst_13 {dimension_numbers = #tpu.dot_dimension_numbers<[1], [0], [0], [1], [0, 0, 1, 1], [], []>} : vector<32x32xf32>, vector<32x128xf32>, vector<32x128xf32> -> vector<32x128xf32>
    %c32 = arith.constant 32 : index
    %c1_14 = arith.constant 1 : index
    %19 = vector.load %arg5[%c32, %c1_14] : memref<64x3xf32, #tpu.memory_space<vmem>>, vector<32x1xf32>
    %20 = vector.broadcast %19 : vector<32x1xf32> to vector<32x128xf32>
    %21 = arith.addf %18, %20 : vector<32x128xf32>
    %cst_15 = arith.constant 0.000000e+00 : f32
    %22 = vector.broadcast %cst_15 : f32 to vector<32x128xf32>
    %23 = arith.maximumf %21, %22 : vector<32x128xf32>
    %c0_16 = arith.constant 0 : index
    %c2 = arith.constant 2 : index
    %24 = vector.load %arg5[%c0_16, %c2] : memref<64x3xf32, #tpu.memory_space<vmem>>, vector<32x1xf32>
    %25 = vector.broadcast %24 : vector<32x1xf32> to vector<32x128xf32>
    %26 = arith.mulf %16, %25 : vector<32x128xf32>
    %cst_17 = arith.constant dense<0.000000e+00> : vector<128xf32>
    %27 = vector.multi_reduction <add>, %26, %cst_17 [0] : vector<32x128xf32> to vector<128xf32>
    %28 = vector.shape_cast %27 : vector<128xf32> to vector<1x128xf32>
    %c0_18 = arith.constant 0 : index
    %c0_19 = arith.constant 0 : index
    %29 = vector.load %arg6[%c0_18, %c0_19] : memref<1x2xf32, #tpu.memory_space<vmem>>, vector<1x1xf32>
    %30 = vector.broadcast %29 : vector<1x1xf32> to vector<1x128xf32>
    %31 = arith.addf %28, %30 : vector<1x128xf32>
    %c32_20 = arith.constant 32 : index
    %c2_21 = arith.constant 2 : index
    %32 = vector.load %arg5[%c32_20, %c2_21] : memref<64x3xf32, #tpu.memory_space<vmem>>, vector<32x1xf32>
    %33 = vector.broadcast %32 : vector<32x1xf32> to vector<32x128xf32>
    %34 = arith.mulf %23, %33 : vector<32x128xf32>
    %cst_22 = arith.constant dense<0.000000e+00> : vector<128xf32>
    %35 = vector.multi_reduction <add>, %34, %cst_22 [0] : vector<32x128xf32> to vector<128xf32>
    %36 = vector.shape_cast %35 : vector<128xf32> to vector<1x128xf32>
    %c0_23 = arith.constant 0 : index
    %c1_24 = arith.constant 1 : index
    %37 = vector.load %arg6[%c0_23, %c1_24] : memref<1x2xf32, #tpu.memory_space<vmem>>, vector<1x1xf32>
    %38 = vector.broadcast %37 : vector<1x1xf32> to vector<1x128xf32>
    %39 = arith.addf %36, %38 : vector<1x128xf32>
    %40 = arith.minimumf %31, %39 : vector<1x128xf32>
    %c0_25 = arith.constant 0 : index
    %c0_26 = arith.constant 0 : index
    %41 = vector.load %arg7[%c0_25, %c0_26] : memref<1x128xf32, #tpu.memory_space<vmem>>, vector<1x128xf32>
    tpu.vector_store %arg7[%c0_25, %c0_26], %40 {strides = array<i32>} : memref<1x128xf32, #tpu.memory_space<vmem>>, vector<1x128xf32>,
    return
  }
  func.func @transform_0(%arg0: i32) -> (i32, i32) {
    %c0_i32 = arith.constant 0 : i32
    %c0_i32_0 = arith.constant 0 : i32
    return %arg0, %c0_i32 : i32, i32
  }
  func.func @transform_1(%arg0: i32) -> (i32, i32) {
    %c0_i32 = arith.constant 0 : i32
    %c0_i32_0 = arith.constant 0 : i32
    %c0_i32_1 = arith.constant 0 : i32
    return %c0_i32, %c0_i32_0 : i32, i32
  }
  func.func @transform_2(%arg0: i32) -> (i32, i32) {
    %c0_i32 = arith.constant 0 : i32
    %c0_i32_0 = arith.constant 0 : i32
    %c0_i32_1 = arith.constant 0 : i32
    return %c0_i32, %c0_i32_0 : i32, i32
  }
  func.func @transform_3(%arg0: i32) -> (i32, i32) {
    %c0_i32 = arith.constant 0 : i32
    %c0_i32_0 = arith.constant 0 : i32
    %c0_i32_1 = arith.constant 0 : i32
    return %c0_i32, %c0_i32_0 : i32, i32
  }
  func.func @transform_4(%arg0: i32) -> (i32, i32) {
    %c0_i32 = arith.constant 0 : i32
    %c0_i32_0 = arith.constant 0 : i32
    %c0_i32_1 = arith.constant 0 : i32
    return %c0_i32, %c0_i32_0 : i32, i32
  }
  func.func @transform_5(%arg0: i32) -> (i32, i32) {
    %c0_i32 = arith.constant 0 : i32
    %c0_i32_0 = arith.constant 0 : i32
    %c0_i32_1 = arith.constant 0 : i32
    return %c0_i32, %c0_i32_0 : i32, i32
  }
  func.func @transform_6(%arg0: i32) -> (i32, i32) {
    %c0_i32 = arith.constant 0 : i32
    %c0_i32_0 = arith.constant 0 : i32
    return %c0_i32, %arg0 : i32, i32
  }
}

</mosaic_0001>

<bundles_post_ra>
// kernel: twinq_forward.1
= control target key start
LH: loop header
LB: loop body
LE: loop exit
PB: predicated region body
PF: predicated region fallthrough
CT: control target
= control target key end

     0   :  { %vm95_vm0 = vcmask 195584   ;;  %v496_v9 = vmov 0   ;;  %v497_v35 = vmov 1   ;;  %v498_v55 = vmov 2   ;;  %s748_s0 = inlined_call_operand.vmem [shape: f32[128,24], index: 0, kind: input, shape index: {}]   ;;  %s749_s4 = inlined_call_operand.vmem [shape: f32[64,3], index: 4, kind: input, shape index: {}]   ;;  %s750_s1 = inlined_call_operand.vmem [shape: f32[64,24], index: 1, kind: input, shape index: {}]   ;;  %s751_s2 = inlined_call_operand.vmem [shape: f32[32,32], index: 2, kind: input, shape index: {}]   ;;  %s752_s5 = inlined_call_operand.vmem [shape: f32[1,2], index: 5, kind: input, shape index: {}]   ;;  %s753_s3 = inlined_call_operand.vmem [shape: f32[32,32], index: 3, kind: input, shape index: {}]   ;;  %s754_s6 = inlined_call_operand.vmem [shape: f32[1,128], index: 6, kind: output, shape index: {}]  }
   0x1   :  { %v46_v0 = vld [vmem:[%s748_s0 + $0x78] sm:$0xff]  ;;  %v45_v1 = vld [vmem:[%s748_s0 + $0x70] sm:$0xff]  ;;  %v44_v2 = vld [vmem:[%s748_s0 + $0x68] sm:$0xff]  ;;  %485 = vset.pattern.permute.xlu0 %v496_v9  ;;  %486 = vset.pattern.permute.xlu1 %v496_v9  ;;  %vm245_vm1 = vcmask 261120  }
   0x2   :  { %466 = vmatpush.xpose.msk.msra.mxu3 %vm95_vm0, %v46_v0  ;;  %434 = vmatpush.xpose.msk.msra.mxu0 %vm95_vm0, %v46_v0  ;;  %v43_v3 = vld [vmem:[%s748_s0 + $0x60] sm:$0xff]  ;;  %v42_v4 = vld [vmem:[%s748_s0 + $0x58] sm:$0xff]  ;;  %v41_v5 = vld [vmem:[%s748_s0 + $0x50] sm:$0xff] }
   0x3   :  { %v40_v6 = vld [vmem:[%s748_s0 + $0x48] sm:$0xff]  ;;  %v39_v7 = vld [vmem:[%s748_s0 + $0x40] sm:$0xff]  ;;  %v38_v8 = vld [vmem:[%s748_s0 + $0x38] sm:$0xff]  ;;  %487 = vset.pattern.permute.xlu2 %v496_v9 }
   0x4   :  { %v583_v10 = vld [vmem:[%s749_s4 + $0x38] sm:$0xff]  ;;  %v37_v11 = vld [vmem:[%s748_s0 + $0x30] sm:$0xff]  ;;  %v36_v12 = vld [vmem:[%s748_s0 + $0x28] sm:$0xff] }
   0x5   :  { %92 = vperm.xlu0 %485, %v583_v10   ;;  %v599_v13 = vld [vmem:[%s749_s4 + $0x30] sm:$0xff]  ;;  %v35_v14 = vld [vmem:[%s748_s0 + $0x20] sm:$0xff]  ;;  %v34_v15 = vld [vmem:[%s748_s0 + $0x18] sm:$0xff] }
   0x6   :  { %467 = vmatpush.xpose.msk.msra.mxu3 %vm95_vm0, %v45_v1  ;;  %435 = vmatpush.xpose.msk.msra.mxu0 %vm95_vm0, %v45_v1  ;;  %v615_v16 = vld [vmem:[%s749_s4 + $0x8] sm:$0xff]  ;;  %v33_v18 = vld [vmem:[%s748_s0 + $0x10] sm:$0xff]  ;;  %v637_v20 = vld [vmem:[%s749_s4 + $0x18] sm:$0xff] }
   0x7   :  { %v620_v17 = vld [vmem:[%s749_s4 + $0x28] sm:$0xff]  ;;  %v31_v21 = vld [vmem:[%s748_s0] sm:$0xff]  ;;  %v25_v25 = vld [vmem:[%s750_s1 + $0x10] sm:$0xff] }
   0x8   :  { %82 = vperm.xlu1 %486, %v620_v17   ;;  %v32_v19 = vld [vmem:[%s748_s0 + $0x8] sm:$0xff]  ;;  %v23_v23 = vld [vmem:[%s750_s1] sm:$0xff]  ;;  %v26_v27 = vld [vmem:[%s750_s1 + $0x18] sm:$0xff] }
   0x9   :  { %v24_v22 = vld [vmem:[%s750_s1 + $0x8] sm:$0xff]  ;;  %v658_v24 = vld [vmem:[%s749_s4] sm:$0xff]  ;;  %v49_v28 = vld [vmem:[%s749_s4 + $0x10] sm:$0xff] }
   0xa   :  { %468 = vmatpush.xpose.msk.msra.mxu3 %vm95_vm0, %v44_v2  ;;  %436 = vmatpush.xpose.msk.msra.mxu0 %vm95_vm0, %v44_v2  ;;  %v51_v26 = vld [vmem:[%s749_s4 + $0x20] sm:$0xff]  ;;  %v28_v30 = vld [vmem:[%s750_s1 + $0x28] sm:$0xff]  ;;  %v29_v31 = vld [vmem:[%s750_s1 + $0x30] sm:$0xff] }
   0xb   :  { %77 = vperm.xlu2 %487, %v51_v26   ;;  %v27_v29 = vld [vmem:[%s750_s1 + $0x20] sm:$0xff]  ;;  %v30_v32 = vld [vmem:[%s750_s1 + $0x38] sm:$0xff]  ;;  %v218_v58 = vld [vmem:[%s751_s2 + $0x8] sm:$0xff] }
   0xc   :  { %v217_v56 = vld [vmem:[%s751_s2] sm:$0xff]  ;;  %v219_v60 = vld [vmem:[%s751_s2 + $0x10] sm:$0xff]  ;;  %v220_v63 = vld [vmem:[%s751_s2 + $0x18] sm:$0xff] }
   0xd   :  { %87 = vperm.xlu0 %485, %v599_v13  }
   0xe   :  { %469 = vmatpush.xpose.msk.msra.mxu3 %vm95_vm0, %v43_v3  ;;  %437 = vmatpush.xpose.msk.msra.mxu0 %vm95_vm0, %v43_v3  ;;  %v385_v3 = vld [vmem:[%s752_s5] sm:$0x1] }
  0x10   :  { %72 = vperm.xlu1 %486, %v637_v20  }
  0x12   :  { %470 = vmatpush.xpose.msk.msra.mxu3 %vm95_vm0, %v42_v4  ;;  %438 = vmatpush.xpose.msk.msra.mxu0 %vm95_vm0, %v42_v4 }
  0x13   :  { %67 = vperm.xlu2 %487, %v49_v28  }
  0x15   :  { %62 = vperm.xlu0 %485, %v615_v16  }
  0x16   :  { %471 = vmatpush.xpose.msk.msra.mxu3 %vm95_vm0, %v41_v5  ;;  %439 = vmatpush.xpose.msk.msra.mxu0 %vm95_vm0, %v41_v5 }
  0x18   :  { %57 = vperm.xlu1 %486, %v658_v24  }
  0x1a   :  { %472 = vmatpush.xpose.msk.msra.mxu3 %vm95_vm0, %v40_v6  ;;  %440 = vmatpush.xpose.msk.msra.mxu0 %vm95_vm0, %v40_v6 }
  0x1b   :  { %488 = vset.pattern.permute.xlu2 %v497_v35 }
  0x1c   :  { %227 = vperm.xlu2 %488, %v658_v24  }
  0x1d   :  { %489 = vset.pattern.permute.xlu0 %v497_v35 }
  0x1e   :  { %473 = vmatpush.xpose.msk.msra.mxu3 %vm95_vm0, %v39_v7  ;;  %441 = vmatpush.xpose.msk.msra.mxu0 %vm95_vm0, %v39_v7 }
  0x1f   :  { %232 = vperm.xlu0 %489, %v615_v16  }
  0x20   :  { %490 = vset.pattern.permute.xlu1 %v497_v35 }
  0x21   :  { %237 = vperm.xlu1 %490, %v49_v28  }
  0x22   :  { %474 = vmatpush.xpose.msk.msra.mxu3 %vm95_vm0, %v38_v8  ;;  %442 = vmatpush.xpose.msk.msra.mxu0 %vm95_vm0, %v38_v8  ;;  %v291_v8 = vld [vmem:[%s753_s3] sm:$0xff] }
  0x24   :  { %242 = vperm.xlu2 %488, %v637_v20  }
  0x26   :  { %475 = vmatpush.xpose.msk.msra.mxu3 %vm95_vm0, %v37_v11  ;;  %443 = vmatpush.xpose.msk.msra.mxu0 %vm95_vm0, %v37_v11  ;;  %v294_v11 = vld [vmem:[%s753_s3 + $0x18] sm:$0xff] }
  0x27   :  { %304 = vperm.xlu0 %489, %v599_v13  }
  0x29   :  { %296 = vperm.xlu1 %490, %v51_v26  }
  0x2a   :  { %476 = vmatpush.xpose.msk.msra.mxu3 %vm95_vm0, %v36_v12  ;;  %444 = vmatpush.xpose.msk.msra.mxu0 %vm95_vm0, %v36_v12 }
  0x2c   :  { %300 = vperm.xlu2 %488, %v620_v17  }
  0x2e   :  { %477 = vmatpush.xpose.msk.msra.mxu3 %vm95_vm0, %v35_v14  ;;  %445 = vmatpush.xpose.msk.msra.mxu0 %vm95_vm0, %v35_v14 }
  0x2f   :  { %492 = vset.pattern.permute.xlu0 %v498_v55 }
  0x30   :  { %361 = vperm.xlu0 %492, %v615_v16  }
  0x31   :  { %308 = vperm.xlu1 %490, %v583_v10  }
  0x32   :  { %478 = vmatpush.xpose.msk.msra.mxu3 %vm95_vm0, %v34_v15  ;;  %446 = vmatpush.xpose.msk.msra.mxu0 %vm95_vm0, %v34_v15 }
  0x34   :  { %491 = vset.pattern.permute.xlu2 %v498_v55 }
  0x35   :  { %357 = vperm.xlu2 %491, %v658_v24  }
  0x36   :  { %479 = vmatpush.xpose.msk.msra.mxu3 %vm95_vm0, %v33_v18  ;;  %447 = vmatpush.xpose.msk.msra.mxu0 %vm95_vm0, %v33_v18 }
  0x38   :  { %369 = vperm.xlu0 %492, %v637_v20  }
  0x39   :  { %493 = vset.pattern.permute.xlu1 %v498_v55 }
  0x3a   :  { %480 = vmatpush.xpose.msk.msra.mxu3 %vm95_vm0, %v32_v19  ;;  %448 = vmatpush.xpose.msk.msra.mxu0 %vm95_vm0, %v32_v19 }
  0x3b   :  { %394 = vperm.xlu1 %493, %v51_v26  }
  0x3d   :  { %398 = vperm.xlu2 %491, %v620_v17  }
  0x3e   :  { %481 = vmatpush.xpose.msk.msra.mxu3 %vm95_vm0, %v31_v21  ;;  %449 = vmatpush.xpose.msk.msra.mxu0 %vm95_vm0, %v31_v21 }
  0x40   :  { %495 = vset.pattern.permute.xlu0 %v497_v35 }
  0x41   :  { %451 = vmatmul.msk.f32.vlgmr.msra.gmra.mxu3 %vm95_vm0, %v24_v22  ;;  %450 = vmatmul.msk.f32.vlgmr.msra.gmra.mxu0 %vm95_vm0, %v23_v23 }
  0x42   :  { %423 = vperm.xlu0 %495, %v385_v3  }
  0x43   :  { %365 = vperm.xlu1 %493, %v49_v28  }
  0x45   :  { %402 = vperm.xlu2 %491, %v599_v13  }
  0x49   :  { %452 = vmatmul.msk.f32.gmra.mxu3 %vm95_vm0, %v25_v25 }
  0x4b   :  { %406 = vperm.xlu1 %493, %v583_v10   ;;  %v293_v10 = vld [vmem:[%s753_s3 + $0x10] sm:$0xff] }
  0x4d   :  { %494 = vset.pattern.permute.xlu2 %v496_v9  ;;  %v292_v9 = vld [vmem:[%s753_s3 + $0x8] sm:$0xff] }
  0x4e   :  { %388 = vperm.xlu2 %494, %v385_v3  }
  0x51   :  { %453 = vmatmul.msk.f32.gmra.mxu3 %vm95_vm0, %v26_v27 }
  0x59   :  { %454 = vmatmul.msk.f32.gmra.mxu3 %vm95_vm0, %v27_v29 }
  0x61   :  { %455 = vmatmul.msk.f32.gmra.mxu3 %vm95_vm0, %v28_v30 }
  0x65   :  { %v78_v37 = vpop.permute.xlu2 %77 }
  0x69   :  { %456 = vmatmul.msk.f32.gmra.mxu3 %vm95_vm0, %v29_v31 }
  0x6d   :  { %v68_v41 = vpop.permute.xlu2 %67 }
  0x71   :  { %457 = vmatmul.msk.f32.gmra.mxu3 %vm95_vm0, %v30_v32 }
  0x76   :  { %v228_v14 = vpop.permute.xlu2 %227 }
  0x77   :  { %v691_v33 = vpop.permute.xlu0 %92 }
  0x7a   :  { %v693_v34 = vpop.permute.xlu1 %82 }
  0x7e   :  { %v243_v18 = vpop.permute.xlu2 %242 }
  0x7f   :  { %v88_v38 = vpop.permute.xlu0 %87 }
  0x82   :  { %v73_v39 = vpop.permute.xlu1 %72 }
  0x86   :  { %v301_v22 = vpop.permute.xlu2 %300 }
  0x87   :  { %v63_v42 = vpop.permute.xlu0 %62 }
  0x8a   :  { %v58_v43 = vpop.permute.xlu1 %57 }
  0x8f   :  { %v358_v32 = vpop.permute.xlu2 %357 }
  0x91   :  { %v233_v16 = vpop.permute.xlu0 %232 }
  0x93   :  { %v238_v12 = vpop.permute.xlu1 %237 }
  0x99   :  { %v305_v20 = vpop.permute.xlu0 %304 }
  0x9b   :  { %v297_v15 = vpop.permute.xlu1 %296 }
  0xa2   :  { %v362_v26 = vpop.permute.xlu0 %361 }
  0xa3   :  { %v309_v19 = vpop.permute.xlu1 %308 }
  0xad   :  { %v395_v23 = vpop.permute.xlu1 %394 }
  0xbe   :  { %v185_v45 = vpop.f32.mrf.mxu0 }
  0xbf   :  { %v186_v50 = vadd.f32 %v185_v45, %v58_v43  ;;  %v399_v45 = vpop.permute.xlu2 %398 }
  0xc1   :  { %v209_v53 = vmax.f32 %v186_v50, 0.0 }
  0xc4   :  { %v188_v36 = vpop.f32.mrf.mxu3 }
  0xc5   :  { %v189_v48 = vadd.f32 %v188_v36, %v63_v42  ;;  %v370_v42 = vpop.permute.xlu0 %369 }
  0xc7   :  { %v210_v52 = vmax.f32 %v189_v48, 0.0 }
  0xcc   :  { %v191_v40 = vpop.f32.mrf.mxu3 }
  0xcd   :  { %v192_v46 = vadd.f32 %v191_v40, %v68_v41 }
  0xcf   :  { %v211_v51 = vmax.f32 %v192_v46, 0.0 }
  0xd4   :  { %v194_v44 = vpop.f32.mrf.mxu3 }
  0xd5   :  { %v195_v47 = vadd.f32 %v194_v44, %v73_v39 }
  0xd7   :  { %v212_v49 = vmax.f32 %v195_v47, 0.0 }
  0xd9   :  { %270 = vmatpush.msra.mxu1 %v212_v49 }
  0xdb   :  { %271 = vmatpush.msra.mxu1 %v211_v51 }
  0xdc   :  { %v197_v54 = vpop.f32.mrf.mxu3 }
  0xdd   :  { %272 = vmatpush.msra.mxu1 %v210_v52  ;;  %v198_v4 = vadd.f32 %v197_v54, %v78_v37  ;;  %v366_v37 = vpop.permute.xlu1 %365 }
  0xdf   :  { %273 = vmatpush.msra.mxu1 %v209_v53  ;;  %v213_v7 = vmax.f32 %v198_v4, 0.0 }
  0xe0   :  { %458 = vmatmul.msk.f32.vlgmr.msra.gmra.mxu1 %vm245_vm1, %v217_v56  ;;  %v403_v56 = vpop.permute.xlu2 %402 }
  0xe4   :  { %v200_v57 = vpop.f32.mrf.mxu3 }
  0xe5   :  { %v201_v1 = vadd.f32 %v200_v57, %v693_v34 }
  0xe7   :  { %v214_v6 = vmax.f32 %v201_v1, 0.0 }
  0xe8   :  { %459 = vmatmul.msk.f32.gmra.mxu1 %vm245_vm1, %v218_v58 }
  0xec   :  { %v203_v59 = vpop.f32.mrf.mxu3 }
  0xed   :  { %v204_v62 = vadd.f32 %v203_v59, %v88_v38 }
  0xef   :  { %v215_v5 = vmax.f32 %v204_v62, 0.0 }
  0xf0   :  { %460 = vmatmul.msk.f32.gmra.mxu1 %vm245_vm1, %v219_v60 }
  0xf4   :  { %v206_v61 = vpop.f32.mrf.mxu3 }
  0xf5   :  { %v207_v0 = vadd.f32 %v206_v61, %v691_v33 }
  0xf7   :  { %v216_v2 = vmax.f32 %v207_v0, 0.0  ;;  %v407_v0 = vpop.permute.xlu1 %406 }
  0xf8   :  { %461 = vmatmul.msk.f32.gmra.mxu1 %vm245_vm1, %v220_v63 }
  0xf9   :  { %335 = vmatpush.msra.mxu2 %v216_v2 }
  0xfb   :  { %336 = vmatpush.msra.mxu2 %v215_v5 }
  0xfd   :  { %337 = vmatpush.msra.mxu2 %v214_v6 }
  0xff   :  { %338 = vmatpush.msra.mxu2 %v213_v7 }
 0x100   :  { %462 = vmatmul.msk.f32.vlgmr.msra.gmra.mxu2 %vm245_vm1, %v291_v8 }
 0x108   :  { %463 = vmatmul.msk.f32.gmra.mxu2 %vm245_vm1, %v292_v9 }
 0x110   :  { %464 = vmatmul.msk.f32.gmra.mxu2 %vm245_vm1, %v293_v10  ;;  %v389_v10 = vpop.permute.xlu2 %388 }
 0x118   :  { %465 = vmatmul.msk.f32.gmra.mxu2 %vm245_vm1, %v294_v11  ;;  %v424_v11 = vpop.permute.xlu0 %423 }
 0x15d   :  { %v275_v13 = vpop.f32.mrf.mxu1 }
 0x15e   :  { %v276_v24 = vadd.f32 %v275_v13, %v228_v14  ;;  %v391_v14 = vperm.slane %v389_v10, 0 }
 0x160   :  { %v287_v28 = vmax.f32 %v276_v24, 0.0 }
 0x162   :  { %v372_v34 = vmul.f32 %v358_v32, %v287_v28 }
 0x165   :  { %v278_v17 = vpop.f32.mrf.mxu1 }
 0x166   :  { %v279_v25 = vadd.f32 %v278_v17, %v233_v16  ;;  %v426_v16 = vperm.slane %v424_v11, 0 }
 0x168   :  { %v288_v29 = vmax.f32 %v279_v25, 0.0 }
 0x16a   :  { %v373_v35 = vmul.f32 %v362_v26, %v288_v29 }
 0x16c   :  { %v376_v39 = vadd.f32 %v373_v35, %v372_v34 }
 0x16d   :  { %v281_v21 = vpop.f32.mrf.mxu1 }
 0x16e   :  { %v282_v30 = vadd.f32 %v281_v21, %v238_v12 }
 0x170   :  { %v289_v33 = vmax.f32 %v282_v30, 0.0 }
 0x172   :  { %v374_v41 = vmul.f32 %v366_v37, %v289_v33 }
 0x174   :  { %v377_v43 = vadd.f32 %v376_v39, %v374_v41 }
 0x175   :  { %v284_v31 = vpop.f32.mrf.mxu1 }
 0x176   :  { %v285_v36 = vadd.f32 %v284_v31, %v243_v18 }
 0x178   :  { %v290_v40 = vmax.f32 %v285_v36, 0.0 }
 0x17a   :  { %v375_v44 = vmul.f32 %v370_v42, %v290_v40 }
 0x17c   :  { %v378_v48 = vadd.f32 %v377_v43, %v375_v44 }
 0x17e   :  { %v379_v52 = vrot.slane %v378_v48, 4 }
 0x180   :  { %v380_v58 = vadd.f32 %v379_v52, %v378_v48 }
 0x182   :  { %v381_v1 = vrot.slane %v380_v58, 2 }
 0x183   :  { %v340_v27 = vpop.f32.mrf.mxu2 }
 0x184   :  { %v341_v49 = vadd.f32 %v340_v27, %v297_v15  ;;  %v382_v5 = vadd.f32 %v381_v1, %v380_v58 }
 0x186   :  { %v352_v53 = vmax.f32 %v341_v49, 0.0  ;;  %v383_v8 = vrot.slane %v382_v5, 1 }
 0x188   :  { %v409_v59 = vmul.f32 %v395_v23, %v352_v53  ;;  %v384_v13 = vadd.f32 %v383_v8, %v382_v5 }
 0x18a   :  { %v392_v18 = vadd.f32 %v391_v14, %v384_v13 }
 0x18b   :  { %v343_v38 = vpop.f32.mrf.mxu2 }
 0x18c   :  { %v344_v46 = vadd.f32 %v343_v38, %v301_v22 }
 0x18e   :  { %v353_v51 = vmax.f32 %v344_v46, 0.0 }
 0x190   :  { %v410_v55 = vmul.f32 %v399_v45, %v353_v51 }
 0x192   :  { %v413_v62 = vadd.f32 %v410_v55, %v409_v59 }
 0x193   :  { %v346_v47 = vpop.f32.mrf.mxu2 }
 0x194   :  { %v347_v50 = vadd.f32 %v346_v47, %v305_v20 }
 0x196   :  { %v354_v54 = vmax.f32 %v347_v50, 0.0 }
 0x198   :  { %v411_v60 = vmul.f32 %v403_v56, %v354_v54 }
 0x19a   :  { %v414_v2 = vadd.f32 %v413_v62, %v411_v60 }
 0x19b   :  { %v349_v57 = vpop.f32.mrf.mxu2 }
 0x19c   :  { %v350_v61 = vadd.f32 %v349_v57, %v309_v19 }
 0x19e   :  { %v355_v63 = vmax.f32 %v350_v61, 0.0 }
 0x1a0   :  { %v412_v3 = vmul.f32 %v407_v0, %v355_v63 }
 0x1a2   :  { %v415_v4 = vadd.f32 %v414_v2, %v412_v3 }
 0x1a4   :  { %v416_v6 = vrot.slane %v415_v4, 4 }
 0x1a6   :  { %v417_v7 = vadd.f32 %v416_v6, %v415_v4 }
 0x1a8   :  { %v418_v9 = vrot.slane %v417_v7, 2 }
 0x1aa   :  { %v419_v12 = vadd.f32 %v418_v9, %v417_v7 }
 0x1ac   :  { %v420_v15 = vrot.slane %v419_v12, 1 }
 0x1ae   :  { %v421_v17 = vadd.f32 %v420_v15, %v419_v12 }
 0x1b0   :  { %v427_v19 = vadd.f32 %v426_v16, %v421_v17 }
 0x1b2   :  { %v428_v20 = vmin.f32 %v392_v18, %v427_v19 }
 0x1b4   :  { %429 = vst [vmem:[%s754_s6] sm:$0x1] %v428_v20 }

</bundles_post_ra>
